<compile_context>
chip_gen: v7x
topology: tpu7x:2x2x1
jax: 0.10.0
libtpu: 0.0.40
codegen_flags: <defaults>
</compile_context>

<pallas_src>
import jax
import jax.numpy as jnp
from jax.experimental import pallas as pl
from jax.experimental.pallas import tpu as pltpu


# ----------------------------------------------------------------------------
# Pallas kernel: normalize -> Linear+ReLU -> Linear -> normalize
# (one grid step = one (modality, batch-tile) pair)
# ----------------------------------------------------------------------------
def _projector_kernel(x_ref, w1_ref, b1_ref, w2_ref, b2_ref, o_ref):
    # x_ref: (tm, D_in) f32 features out of the (stand-in) CLIP encoder.
    x = x_ref[...]

    # F.normalize(x, dim=-1, p=2) == x / max(||x||_2, 1e-12)
    #                             == x * rsqrt(max(sum(x^2), 1e-24))
    # rsqrt lowers to the (otherwise idle) EUP slot -> no vector divide.
    inv = jax.lax.rsqrt(jnp.maximum(jnp.sum(x * x, axis=-1, keepdims=True), 1e-24))
    xn = (x * inv).astype(jnp.bfloat16)        # bf16 operands feed the MXU fast path

    b1 = b1_ref[...]                            # (1, P) f32, read once
    b2 = b2_ref[...]

    # Linear(D_in, P) + ReLU   (Dropout(p=0.2) is identity at inference)
    h = jnp.dot(xn, w1_ref[...], preferred_element_type=jnp.float32) + b1
    h = jnp.maximum(h, 0.0).astype(jnp.bfloat16)   # elementwise stays f32; cast only for MXU

    # Linear(P, P)
    y = jnp.dot(h, w2_ref[...], preferred_element_type=jnp.float32) + b2

    # Final F.normalize (f32)
    inv_y = jax.lax.rsqrt(jnp.maximum(jnp.sum(y * y, axis=-1, keepdims=True), 1e-24))
    o_ref[...] = (y * inv_y).astype(o_ref.dtype)


def fused_projector_heads(features, w1, b1, w2, b2, *, block_rows=512):
    """Run both projector heads (image + text) in a single gridded pallas_call.

    features : (2, B, D_in) float32   stacked [image_feat, text_feat]
    w1       : (2, D_in, P) bfloat16  stacked Linear1 weights (already transposed)
    b1       : (2, 1, P)    float32
    w2       : (2, P, P)    bfloat16
    b2       : (2, 1, P)    float32
    returns  : (2, B, P)    float32, L2-normalized rows
    """
    M, B, D_in = features.shape
    P = w1.shape[-1]

    # Batch tile: round up to a sublane multiple (8); cap at block_rows so
    # 2 (pipeline bufs) x input tile + resident weights stay well inside the
    # scoped-VMEM budget on every generation (v5e/v6e 128 MiB, v7x 64 MiB VMEM).
    tm = min(max(8, ((B + 7) // 8) * 8), block_rows)
    b_pad = pl.cdiv(B, tm) * tm
    if b_pad != B:
        features = jnp.pad(features, ((0, 0), (0, b_pad - B), (0, 0)))
    nb = b_pad // tm

    out = pl.pallas_call(
        _projector_kernel,
        out_shape=jax.ShapeDtypeStruct((M, b_pad, P), jnp.float32),
        grid=(M, nb),
        in_specs=[
            # features: new batch tile every step of axis 1
            pl.BlockSpec((None, tm, D_in), lambda m, i: (m, i, 0)),
            # per-modality weights/biases stay VMEM-resident across batch tiles
            # (index_map is constant in i -> re-DMA only when modality changes)
            pl.BlockSpec((None, D_in, P), lambda m, i: (m, 0, 0)),
            pl.BlockSpec((None, 1, P), lambda m, i: (m, 0, 0)),
            pl.BlockSpec((None, P, P), lambda m, i: (m, 0, 0)),
            pl.BlockSpec((None, 1, P), lambda m, i: (m, 0, 0)),
        ],
        out_specs=pl.BlockSpec((None, tm, P), lambda m, i: (m, i, 0)),
        compiler_params=pltpu.CompilerParams(
            dimension_semantics=("parallel", "parallel"),  # megacore-shardable
            vmem_limit_bytes=64 * 1024 * 1024,
        ),
    )(features, w1, b1, w2, b2)

    return out[:, :B, :]


# ----------------------------------------------------------------------------
# Stand-in CLIP encoders (plain-JAX glue; not part of the module's own code).
# ----------------------------------------------------------------------------
def encode_image_backbone(images, w_img):
    # images: (B, 3, H, W) NCHW  ->  flatten -> linear to embed_dim
    B = images.shape[0]
    flat = images.reshape(B, -1)
    return flat @ w_img                      # (B, embed_dim)


def encode_text_backbone(tokens, token_emb, w_txt):
    # tokens: (B, L) int32 -> embed -> mean-pool -> linear to embed_dim
    emb = token_emb[tokens]                  # (B, L, E)
    pooled = emb.mean(axis=1)                # (B, E)
    return pooled @ w_txt                    # (B, embed_dim)


# ----------------------------------------------------------------------------
# Full CLIPWithProjector.forward
# ----------------------------------------------------------------------------
def clip_with_projector_forward(images, texts, params):
    img_feat = encode_image_backbone(images, params["w_img_enc"])
    txt_feat = encode_text_backbone(texts, params["token_emb"], params["w_txt_enc"])

    # Stack the two modalities so one fused Pallas kernel handles both heads.
    feats = jnp.stack([img_feat, txt_feat], axis=0).astype(jnp.float32)  # (2, B, D_in)
    proj = fused_projector_heads(
        feats, params["w1"], params["b1"], params["w2"], params["b2"]
    )
    return proj[0], proj[1]


# ----------------------------------------------------------------------------
# Pure-JAX reference for the projector head (correctness check only).
# ----------------------------------------------------------------------------
def _projector_ref(x, w1, b1, w2, b2):
    xn = x / jnp.maximum(jnp.linalg.norm(x, axis=-1, keepdims=True), 1e-12)
    h = jnp.maximum(xn @ w1.astype(jnp.float32) + b1, 0.0)
    y = h @ w2.astype(jnp.float32) + b2
    return y / jnp.maximum(jnp.linalg.norm(y, axis=-1, keepdims=True), 1e-12)


if __name__ == "__main__":
    # Small, deterministic shapes.
    B = 2          # batch
    C, H, W = 3, 16, 16
    L = 8          # token sequence length
    VOCAB = 32
    TOK_E = 16     # token embedding width (stand-in text backbone)
    EMBED = 64     # clip_model.visual.output_dim == text_projection.shape[1]
    PROJ = 128     # projector_dim

    key = jax.random.PRNGKey(0)
    keys = jax.random.split(key, 9)

    # Inputs
    images = jax.random.normal(keys[0], (B, C, H, W), dtype=jnp.float32)
    texts = jax.random.randint(keys[1], (B, L), 0, VOCAB, dtype=jnp.int32)

    # Deterministic parameters
    s = 0.05
    params = {
        # stand-in CLIP backbones
        "w_img_enc": s * jax.random.normal(keys[2], (C * H * W, EMBED), jnp.float32),
        "token_emb": s * jax.random.normal(keys[3], (VOCAB, TOK_E), jnp.float32),
        "w_txt_enc": s * jax.random.normal(keys[4], (TOK_E, EMBED), jnp.float32),
        # Stacked projector params: index 0 = image head, index 1 = text head.
        # Weights stored in bf16 at rest (halves weight DMA; f32 accumulate in-kernel).
        "w1": (s * jax.random.normal(keys[5], (2, EMBED, PROJ), jnp.float32)
               ).astype(jnp.bfloat16),
        "b1": s * jax.random.normal(keys[6], (2, 1, PROJ), jnp.float32),
        "w2": (s * jax.random.normal(keys[7], (2, PROJ, PROJ), jnp.float32)
               ).astype(jnp.bfloat16),
        "b2": s * jax.random.normal(keys[8], (2, 1, PROJ), jnp.float32),
    }

    image_features, text_features = clip_with_projector_forward(images, texts, params)
    jax.block_until_ready((image_features, text_features))

    # Sanity checks: shapes, unit-norm rows, and agreement with pure-JAX reference.
    assert image_features.shape == (B, PROJ)
    assert text_features.shape == (B, PROJ)
    assert jnp.allclose(jnp.linalg.norm(image_features, axis=-1), 1.0, atol=1e-3)
    assert jnp.allclose(jnp.linalg.norm(text_features, axis=-1), 1.0, atol=1e-3)

    img_feat = encode_image_backbone(images, params["w_img_enc"])
    txt_feat = encode_text_backbone(texts, params["token_emb"], params["w_txt_enc"])
    ref_img = _projector_ref(img_feat, params["w1"][0], params["b1"][0],
                             params["w2"][0], params["b2"][0])
    ref_txt = _projector_ref(txt_feat, params["w1"][1], params["b1"][1],
                             params["w2"][1], params["b2"][1])
    assert jnp.max(jnp.abs(image_features - ref_img)) < 2e-2
    assert jnp.max(jnp.abs(text_features - ref_txt)) < 2e-2

    print("KERNEL_OK")
</pallas_src>

<mosaic_0001>
module attributes {stable_mosaic.version = 11 : i64} {
  func.func @_projector_kernel(%arg0: i32, %arg1: i32, %arg2: memref<1x8x64xf32, #tpu.memory_space<vmem>>, %arg3: memref<1x64x128xbf16, #tpu.memory_space<vmem>>, %arg4: memref<1x1x128xf32, #tpu.memory_space<vmem>>, %arg5: memref<1x128x128xbf16, #tpu.memory_space<vmem>>, %arg6: memref<1x1x128xf32, #tpu.memory_space<vmem>>, %arg7: memref<1x8x128xf32, #tpu.memory_space<vmem>>) attributes {dimension_semantics = [#tpu.dimension_semantics<parallel>, #tpu.dimension_semantics<parallel>], iteration_bounds = array<i64: 2, 1>, scalar_prefetch = 0 : i64, scratch_operands = 0 : i64, tpu.core_type = #tpu.core_type<tc>, window_params = [{transform_indices = @transform_0, window_bounds = array<i64: 1, 8, 64>}, {transform_indices = @transform_1, window_bounds = array<i64: 1, 64, 128>}, {transform_indices = @transform_2, window_bounds = array<i64: 1, 1, 128>}, {transform_indices = @transform_3, window_bounds = array<i64: 1, 128, 128>}, {transform_indices = @transform_4, window_bounds = array<i64: 1, 1, 128>}, {transform_indices = @transform_5, window_bounds = array<i64: 1, 8, 128>}]} {
    %c0 = arith.constant 0 : index
    %c0_0 = arith.constant 0 : index
    %c0_1 = arith.constant 0 : index
    %0 = vector.load %arg2[%c0, %c0_0, %c0_1] : memref<1x8x64xf32, #tpu.memory_space<vmem>>, vector<1x8x64xf32>
    %1 = vector.shape_cast %0 : vector<1x8x64xf32> to vector<8x64xf32>
    %2 = arith.mulf %1, %1 : vector<8x64xf32>
    %cst = arith.constant dense<0.000000e+00> : vector<8xf32>
    %3 = vector.multi_reduction <add>, %2, %cst [1] : vector<8x64xf32> to vector<8xf32>
    %4 = vector.shape_cast %3 : vector<8xf32> to vector<8x1xf32>
    %cst_2 = arith.constant 1.000000e-24 : f32
    %5 = vector.broadcast %cst_2 : f32 to vector<8x1xf32>
    %6 = arith.maximumf %4, %5 : vector<8x1xf32>
    %7 = math.rsqrt %6 : vector<8x1xf32>
    %8 = vector.broadcast %7 : vector<8x1xf32> to vector<8x64xf32>
    %9 = arith.mulf %1, %8 : vector<8x64xf32>
    %10 = arith.truncf %9 : vector<8x64xf32> to vector<8x64xbf16>
    %c0_3 = arith.constant 0 : index
    %c0_4 = arith.constant 0 : index
    %c0_5 = arith.constant 0 : index
    %11 = vector.load %arg4[%c0_3, %c0_4, %c0_5] : memref<1x1x128xf32, #tpu.memory_space<vmem>>, vector<1x1x128xf32>
    %12 = vector.shape_cast %11 : vector<1x1x128xf32> to vector<1x128xf32>
    %c0_6 = arith.constant 0 : index
    %c0_7 = arith.constant 0 : index
    %c0_8 = arith.constant 0 : index
    %13 = vector.load %arg6[%c0_6, %c0_7, %c0_8] : memref<1x1x128xf32, #tpu.memory_space<vmem>>, vector<1x1x128xf32>
    %14 = vector.shape_cast %13 : vector<1x1x128xf32> to vector<1x128xf32>
    %c0_9 = arith.constant 0 : index
    %c0_10 = arith.constant 0 : index
    %c0_11 = arith.constant 0 : index
    %15 = vector.load %arg3[%c0_9, %c0_10, %c0_11] : memref<1x64x128xbf16, #tpu.memory_space<vmem>>, vector<1x64x128xbf16>
    %16 = vector.shape_cast %15 : vector<1x64x128xbf16> to vector<64x128xbf16>
    %cst_12 = arith.constant dense<0.000000e+00> : vector<8x128xf32>
    %17 = tpu.matmul %10, %16, %cst_12 {dimension_numbers = #tpu.dot_dimension_numbers<[1], [0], [0], [1], [0, 0, 1, 1], [], []>} : vector<8x64xbf16>, vector<64x128xbf16>, vector<8x128xf32> -> vector<8x128xf32>
    %18 = vector.broadcast %12 : vector<1x128xf32> to vector<8x128xf32>
    %19 = arith.addf %17, %18 : vector<8x128xf32>
    %cst_13 = arith.constant 0.000000e+00 : f32
    %20 = vector.broadcast %cst_13 : f32 to vector<8x128xf32>
    %21 = arith.maximumf %19, %20 : vector<8x128xf32>
    %22 = arith.truncf %21 : vector<8x128xf32> to vector<8x128xbf16>
    %c0_14 = arith.constant 0 : index
    %c0_15 = arith.constant 0 : index
    %c0_16 = arith.constant 0 : index
    %23 = vector.load %arg5[%c0_14, %c0_15, %c0_16] : memref<1x128x128xbf16, #tpu.memory_space<vmem>>, vector<1x128x128xbf16>
    %24 = vector.shape_cast %23 : vector<1x128x128xbf16> to vector<128x128xbf16>
    %cst_17 = arith.constant dense<0.000000e+00> : vector<8x128xf32>
    %25 = tpu.matmul %22, %24, %cst_17 {dimension_numbers = #tpu.dot_dimension_numbers<[1], [0], [0], [1], [0, 0, 1, 1], [], []>} : vector<8x128xbf16>, vector<128x128xbf16>, vector<8x128xf32> -> vector<8x128xf32>
    %26 = vector.broadcast %14 : vector<1x128xf32> to vector<8x128xf32>
    %27 = arith.addf %25, %26 : vector<8x128xf32>
    %28 = arith.mulf %27, %27 : vector<8x128xf32>
    %cst_18 = arith.constant dense<0.000000e+00> : vector<8xf32>
    %29 = vector.multi_reduction <add>, %28, %cst_18 [1] : vector<8x128xf32> to vector<8xf32>
    %30 = vector.shape_cast %29 : vector<8xf32> to vector<8x1xf32>
    %cst_19 = arith.constant 1.000000e-24 : f32
    %31 = vector.broadcast %cst_19 : f32 to vector<8x1xf32>
    %32 = arith.maximumf %30, %31 : vector<8x1xf32>
    %33 = math.rsqrt %32 : vector<8x1xf32>
    %34 = vector.broadcast %33 : vector<8x1xf32> to vector<8x128xf32>
    %35 = arith.mulf %27, %34 : vector<8x128xf32>
    %c0_20 = arith.constant 0 : index
    %c0_21 = arith.constant 0 : index
    %c0_22 = arith.constant 0 : index
    %36 = vector.load %arg7[%c0_20, %c0_21, %c0_22] : memref<1x8x128xf32, #tpu.memory_space<vmem>>, vector<1x8x128xf32>
    %37 = vector.shape_cast %36 : vector<1x8x128xf32> to vector<8x128xf32>
    %38 = vector.shape_cast %35 : vector<8x128xf32> to vector<1x8x128xf32>
    tpu.vector_store %arg7[%c0_20, %c0_21, %c0_22], %38 {strides = array<i32>} : memref<1x8x128xf32, #tpu.memory_space<vmem>>, vector<1x8x128xf32>,
    return
  }
  func.func @transform_0(%arg0: i32, %arg1: i32) -> (i32, i32, i32) {
    %c0_i32 = arith.constant 0 : i32
    %c0_i32_0 = arith.constant 0 : i32
    return %arg0, %arg1, %c0_i32 : i32, i32, i32
  }
  func.func @transform_1(%arg0: i32, %arg1: i32) -> (i32, i32, i32) {
    %c0_i32 = arith.constant 0 : i32
    %c0_i32_0 = arith.constant 0 : i32
    %c0_i32_1 = arith.constant 0 : i32
    return %arg0, %c0_i32, %c0_i32_0 : i32, i32, i32
  }
  func.func @transform_2(%arg0: i32, %arg1: i32) -> (i32, i32, i32) {
    %c0_i32 = arith.constant 0 : i32
    %c0_i32_0 = arith.constant 0 : i32
    %c0_i32_1 = arith.constant 0 : i32
    return %arg0, %c0_i32, %c0_i32_0 : i32, i32, i32
  }
  func.func @transform_3(%arg0: i32, %arg1: i32) -> (i32, i32, i32) {
    %c0_i32 = arith.constant 0 : i32
    %c0_i32_0 = arith.constant 0 : i32
    %c0_i32_1 = arith.constant 0 : i32
    return %arg0, %c0_i32, %c0_i32_0 : i32, i32, i32
  }
  func.func @transform_4(%arg0: i32, %arg1: i32) -> (i32, i32, i32) {
    %c0_i32 = arith.constant 0 : i32
    %c0_i32_0 = arith.constant 0 : i32
    %c0_i32_1 = arith.constant 0 : i32
    return %arg0, %c0_i32, %c0_i32_0 : i32, i32, i32
  }
  func.func @transform_5(%arg0: i32, %arg1: i32) -> (i32, i32, i32) {
    %c0_i32 = arith.constant 0 : i32
    %c0_i32_0 = arith.constant 0 : i32
    return %arg0, %arg1, %c0_i32 : i32, i32, i32
  }
}

</mosaic_0001>

<bundles_post_ra>
// kernel: tpu_custom_call.1
= control target key start
LH: loop header
LB: loop body
LE: loop exit
PB: predicated region body
PF: predicated region fallthrough
CT: control target
= control target key end

     0   :  { %s1589_s0 = inlined_call_operand.hbm [shape: f32[2,8,64], index: 0, kind: input, shape index: {}]   ;;  %s1590_s1 = inlined_call_operand.hbm [shape: bf16[2,64,128], index: 1, kind: input, shape index: {}]   ;;  %s1591_s2 = inlined_call_operand.hbm [shape: f32[2,1,128], index: 2, kind: input, shape index: {}]   ;;  %s1592_s3 = inlined_call_operand.hbm [shape: bf16[2,128,128], index: 3, kind: input, shape index: {}]   ;;  %s1593_s4 = inlined_call_operand.hbm [shape: f32[2,1,128], index: 4, kind: input, shape index: {}]   ;;  %s1594_s5 = inlined_call_operand.hbm [shape: f32[2,8,128], index: 5, kind: output, shape index: {}]  }
   0x1   :  { %1605 = sst [smem:[#allocation20_spill]] %s1589_s0 }
   0x2   :  { %1606 = sst [smem:[#allocation21_spill]] %s1590_s1 }
   0x3   :  { %1607 = sst [smem:[#allocation22_spill]] %s1592_s3 }
   0x4   :  { %10 = vsyncpa [#allocation3], 0 }
   0x5   :  { %12 = vsyncpa [#allocation3 + $0x1], 0 }
   0x6   :  { %13 = vsyncpa [#allocation6], 0 }
   0x7   :  { %15 = vsyncpa [#allocation6 + $0x1], 0 }
   0x8   :  { %16 = vsyncpa [#allocation9], 0 }
   0x9   :  { %18 = vsyncpa [#allocation9 + $0x1], 0 }
   0xa   :  { %19 = vsyncpa [#allocation4], 0 }
   0xb   :  { %21 = vsyncpa [#allocation4 + $0x1], 0  ;;  %s1257_s18 = smov 0   ;;  %s1259_s19 = smov 0  }
   0xc   :  { %s1261_s20 = smov 0   ;;  %s1263_s21 = smov 0  }
   0xd   :  { %s1265_s22 = smov 0   ;;  %s1267_s23 = smov 0  }
   0xe LB: > { %1608 = sst [smem:[#allocation16_spill]] %s1203_s20  ;;  %s1288_s24 = sadd.s32 4294967295, %s1215_s23   ;;  %s1215_s23 = sphi %s1267_s23, %s27_s23   ;;  %s1211_s22 = sphi %s1265_s22, %s1639_s22   ;;  %s1207_s21 = sphi %s1263_s21, %s1638_s21   ;;  %s1203_s20 = sphi %s1261_s20, %s1634_s20   ;;  %s1199_s19 = sphi %s1259_s19, %s1637_s19   ;;  %s1195_s18 = sphi %s1257_s18, %s1636_s18  }
   0xf   : > { %1609 = sst [smem:[#allocation17_spill]] %s1215_s23  ;;  %s788_s25 = sadd.s32 4294967294, %s1215_s23  }
  0x10   : > { %s39_s26 = sadd.s32 1, %s1211_s22  ;;  %s48_s27 = sadd.s32 1, %s1203_s20 }
  0x11   : > { %p41_p0 = scmp.ge.s32.totalorder %s39_s26, 2  ;;  %p55_p1 = scmp.ne.s32.totalorder %s1203_s20, %s1199_s19 }
  0x12   : > { %p56_p2 = scmp.eq.s32.totalorder %s1215_s23, 0  ;;  %p61_p3 = scmp.ne.s32.totalorder %s1199_s19, %s1195_s18 }
  0x13   : > { %s1641_s26 = smov (%p41_p0, %s39_s26), 0  ;;  %p62_p5 = scmp.eq.s32.totalorder %s1288_s24, 0 }
  0x14   : > { %1610 = sst [smem:[#allocation18_spill]] %s1641_s26  ;;  %p1300_p4 = por %p56_p2, %p55_p1 }
  0x15   : > { %s43_s29 = ssub.s32 %s1211_s22, %s1641_s26  ;;  %p191_p6 = scmp.eq.s32.totalorder %s1288_s24, 1 }
  0x16   : > { %p46_p7 = scmp.eq.s32.totalorder %s43_s29, 0  ;;  %p1308_p8 = por %p62_p5, %p61_p3 }
  0x17   : > { %p1312_p9 = por %p191_p6, %p55_p1  ;;  %p197_p10 = scmp.eq.s32.totalorder %s788_s25, 1 }
  0x18   : > { %s1612_s30 = scalar_select %p1308_p8, 1, 0 }
  0x19   : > { %s1613_s6 = scalar_select %p1312_p9, 1, 0 }
  0x1a   : > { %s1317_s7 = scalar_select %p46_p7, %s1203_s20, %s48_s27  }
  0x1b   : > { %p1319_p11 = por %p197_p10, %p61_p3  ;;  %p905_p13 = scmp.lt.s32.totalorder %s1215_s23, 2 }
  0x1c   : > { %1614 = sst [smem:[#allocation19_spill]] %s1317_s7  ;;  %s1326_s9 = sand.u32 1, %s1203_s20  }
  0x1d   : > { %s1615_s8 = scalar_select %p1319_p11, 1, 0 }
  0x1e   : > { %s1595_s10 = sand.u32 1, %s1215_s23   ;;  %s793_s11 = sshll.u32 %s1326_s9, 5 }
  0x1f   : > { %p1332_p0 = pnand %p905_p13, %p1300_p4  ;;  %s825_s13 = sshll.u32 %s1211_s22, 9 }
  0x20   : > { %s1617_s1 = sld [smem:[#allocation21_spill]]  ;;  %s240_s17 = scalar_lea.vmem [#allocation5], %s793_s11 }
  0x21   : > { %s1616_s12 = scalar_select %p1332_p0, 1, 0 }
  0x22   : > { %s247_s25 = sshll.u32 %s240_s17, 4  ;;  %s1346_s27 = scalar_lea.sflag [#allocation6], %s1595_s10  ;;  %s1342_s25 = int_to_ptr.vmem [resolvable:$true] %s247_s25 }
  0x23   : > { %p1352_p2 = pneg %p1332_p0 }
  0x26   : > { %s1340_s16 = scalar_lea.hbm %s1617_s1, %s825_s13  ;;  %s980_s11 = scalar_lea.hbm %s1617_s1, 1024 }
  0x27   : > { %s975_s28 = scalar_lea.hbm %s1340_s16, 512  ;;  %p981_p5 = scmp.lt.u32.totalorder %s1340_s16, %s1617_s1 }
  0x28   : > { %p976_p1 = scmp.ne.s32.totalorder %s1340_s16, %s975_s28  ;;  %p982_p6 = scmp.lt.u32.totalorder %s980_s11, %s975_s28 }
  0x29   : > { %p984_p10 = scmp.lt.u32.totalorder %s975_s28, %s1340_s16 }
  0x2a   : > { %p978_p3 = pnand %p1352_p2, %p976_p1  ;;  %p983_p7 = por %p982_p6, %p981_p5 }
  0x2c   : > { %p979_p4 = pneg %p978_p3  ;;  %p985_p13 = por %p984_p10, %p983_p7 }
  0x2e   : > { %p986_p12 = pnand %p985_p13, %p979_p4 }
  0x30   : > { %989 = shalt.err (!%p986_p12)
}
  0x31   : > { %s990_s10 = scalar_lea.vmem %s1342_s25, 512  ;;  %s1217_s13 = smov [#allocation5]  }
  0x32   : > { %p991_p1 = scmp.ne.s32.totalorder %s1342_s25, %s990_s10  ;;  %s995_s14 = sshll.u32 %s1217_s13, 4  ;;  %s996_s14 = int_to_ptr.vmem [resolvable:$false] %s995_s14 }
  0x33   : > { %s997_s15 = scalar_lea.vmem %s996_s14, 1024  ;;  %p998_p9 = scmp.lt.s32.totalorder %s1342_s25, %s996_s14 }
  0x34   : > { %p993_p3 = pnand %p991_p1, %p1352_p2  ;;  %p999_p8 = scmp.lt.s32.totalorder %s997_s15, %s990_s10 }
  0x36   : > { %p994_p11 = pneg %p993_p3  ;;  %p1000_p5 = por %p999_p8, %p998_p9 }
  0x38   : > { %p1001_p6 = pnand %p1000_p5, %p994_p11 }
  0x3a   : > { %1004 = shalt.err (!%p1001_p6)
}
  0x3b   : > { %s1599_s28 = smov 64   ;;  %s1219_s11 = smov 4  }
  0x3c   : > { %891 = dma.hbm_to_vmem [thread:$0]  (!%p1332_p0), %s1340_s16, 512, %s1342_s25, %s1346_s27, %s1599_s28, %s1599_s28, %s1219_s11  }
  0x3d   : > { %p801_p8 = scmp.ge.s32.totalorder %s1215_s23, 1  ;;  %p310_p9 = scmp.lt.s32.totalorder %s1215_s23, 3 }
  0x3e   : > { %s797_s10 = sshll.u32 %s1326_s9, 6  ;;  %s826_s13 = sshll.u32 %s1211_s22, 10 }
  0x3f   : > { %p1382_p11 = pnand %p801_p8, %p310_p9  ;;  %s278_s14 = scalar_lea.vmem [#allocation8], %s797_s10 }
  0x40   : > { %s285_s15 = sshll.u32 %s278_s14, 4  ;;  %s1620_s3 = sld [smem:[#allocation22_spill]]  ;;  %s1392_s15 = int_to_ptr.vmem [resolvable:$true] %s285_s15 }
  0x41   : > { %s1619_s17 = scalar_select %p1382_p11, 1, 0 }
  0x42   : > { %s1621_s16 = sand.u32 1, %s1215_s23  }
  0x43   : > { %s1396_s25 = scalar_lea.sflag [#allocation9], %s1621_s16 }
  0x46   : > { %s1390_s7 = scalar_lea.hbm %s1620_s3, %s826_s13  ;;  %s1010_s1 = scalar_lea.hbm %s1620_s3, 2048 }
  0x47   : > { %s1005_s28 = scalar_lea.hbm %s1390_s7, 1024  ;;  %p1011_p10 = scmp.lt.u32.totalorder %s1390_s7, %s1620_s3 }
  0x48   : > { %p1006_p12 = scmp.ne.s32.totalorder %s1390_s7, %s1005_s28  ;;  %p1012_p13 = scmp.lt.u32.totalorder %s1010_s1, %s1005_s28 }
  0x49   : > { %p1014_p3 = scmp.lt.u32.totalorder %s1005_s28, %s1390_s7 }
  0x4a   : > { %p1008_p4 = pnand %p1006_p12, %p1352_p2  ;;  %p1013_p1 = por %p1012_p13, %p1011_p10 }
  0x4c   : > { %p1009_p7 = pneg %p1008_p4  ;;  %p1015_p5 = por %p1014_p3, %p1013_p1 }
  0x4e   : > { %p1016_p6 = pnand %p1015_p5, %p1009_p7 }
  0x50   : > { %1019 = shalt.err (!%p1016_p6)
}
  0x51   : > { %s1020_s16 = scalar_lea.vmem %s1392_s15, 1024  ;;  %s1220_s10 = smov [#allocation8]  }
  0x52   : > { %p1021_p8 = scmp.ne.s32.totalorder %s1392_s15, %s1020_s16  ;;  %s1025_s14 = sshll.u32 %s1220_s10, 4  ;;  %s1026_s14 = int_to_ptr.vmem [resolvable:$false] %s1025_s14 }
  0x53   : > { %s1027_s26 = scalar_lea.vmem %s1026_s14, 2048  ;;  %p1028_p4 = scmp.lt.s32.totalorder %s1392_s15, %s1026_s14 }
  0x54   : > { %p1023_p9 = pnand %p1021_p8, %p1352_p2  ;;  %p1029_p11 = scmp.lt.s32.totalorder %s1027_s26, %s1020_s16 }
  0x56   : > { %p1024_p12 = pneg %p1023_p9  ;;  %p1030_p10 = por %p1029_p11, %p1028_p4 }
  0x58   : > { %p1031_p13 = pnand %p1030_p10, %p1024_p12 }
  0x5a   : > { %1034 = shalt.err (!%p1031_p13)
}
  0x5b   : > { %s1622_s28 = smov 64   ;;  %s791_s1 = sshll.u32 %s1326_s9, 3 }
  0x5c   : > { %897 = dma.hbm_to_vmem [thread:$0]  (!%p1332_p0), %s1390_s7, 1024, %s1392_s15, %s1396_s25, %s1622_s28, %s1622_s28, %s1219_s11  }
  0x5d   : > { %s792_s13 = sshll.u32 %s1211_s22, 7  ;;  %s1623_s0 = sld [smem:[#allocation20_spill]] }
  0x5e   : > { %s221_s26 = scalar_lea.vmem [#allocation2], %s791_s1  ;;  %s218_s20 = scalar_lea.sflag [#allocation3], %s1326_s9 }
  0x5f   : > { %s229_s3 = sshll.u32 %s221_s26, 4  ;;  %s230_s3 = int_to_ptr.vmem [resolvable:$true] %s229_s3 }
  0x63   : > { %s1428_s14 = scalar_lea.hbm %s1623_s0, %s792_s13  ;;  %s1040_s15 = scalar_lea.hbm %s1623_s0, 256 }
  0x64   : > { %s1035_s23 = scalar_lea.hbm %s1428_s14, 128  ;;  %p1041_p3 = scmp.lt.u32.totalorder %s1428_s14, %s1623_s0 }
  0x65   : > { %p1036_p11 = scmp.ne.s32.totalorder %s1428_s14, %s1035_s23  ;;  %p1042_p5 = scmp.lt.u32.totalorder %s1040_s15, %s1035_s23 }
  0x66   : > { %p1044_p8 = scmp.lt.u32.totalorder %s1035_s23, %s1428_s14 }
  0x67   : > { %p1038_p7 = pnand %p1036_p11, %p1352_p2  ;;  %p1043_p6 = por %p1042_p5, %p1041_p3 }
  0x69   : > { %p1039_p1 = pneg %p1038_p7  ;;  %p1045_p9 = por %p1044_p8, %p1043_p6 }
  0x6b   : > { %p1046_p12 = pnand %p1045_p9, %p1039_p1 }
  0x6d   : > { %1049 = shalt.err (!%p1046_p12)
}
  0x6e   : > { %s1050_s1 = scalar_lea.vmem %s230_s3, 128  ;;  %s1221_s10 = smov [#allocation2]  }
  0x6f   : > { %p1051_p4 = scmp.ne.s32.totalorder %s230_s3, %s1050_s1  ;;  %s1055_s16 = sshll.u32 %s1221_s10, 4  ;;  %s1056_s16 = int_to_ptr.vmem [resolvable:$false] %s1055_s16 }
  0x70   : > { %s1057_s26 = scalar_lea.vmem %s1056_s16, 256  ;;  %p1058_p11 = scmp.lt.s32.totalorder %s230_s3, %s1056_s16 }
  0x71   : > { %p1053_p10 = pnand %p1051_p4, %p1352_p2  ;;  %p1059_p7 = scmp.lt.s32.totalorder %s1057_s26, %s1050_s1 }
  0x73   : > { %p1054_p13 = pneg %p1053_p10  ;;  %p1060_p0 = por %p1059_p7, %p1058_p11 }
  0x75   : > { %p1061_p3 = pnand %p1060_p0, %p1054_p13 }
  0x77   : > { %1064 = shalt.err (!%p1061_p3)
}
  0x78   : > { %p1624_p5 = scmp.ne.s32.totalorder %s1616_s12, 0  ;;  %s796_s23 = sshll.u32 %s1211_s22, 4 }
  0x79   : > { %s260_s7 = scalar_lea.vmem [#allocation7], %s1326_s9  ;;  %s265_s13 = scalar_lea.hbm %s1591_s2, %s796_s23 }
  0x7a   : > { %888 = dma.hbm_to_vmem [thread:$0]  (!%p1624_p5), %s1428_s14, 128, %s230_s3, %s218_s20  }
  0x7b   : > { %s267_s11 = sshll.u32 %s260_s7, 4  ;;  %s1065_s1 = scalar_lea.hbm %s265_s13, 16  ;;  %s268_s11 = int_to_ptr.vmem [resolvable:$true] %s267_s11 }
  0x7c   : > { %p1066_p0 = scmp.ne.s32.totalorder %s265_s13, %s1065_s1  ;;  %s1070_s26 = scalar_lea.hbm %s1591_s2, 32 }
  0x7d   : > { %p1071_p8 = scmp.lt.u32.totalorder %s265_s13, %s1591_s2  ;;  %p1072_p9 = scmp.lt.u32.totalorder %s1070_s26, %s1065_s1 }
  0x7e   : > { %p1068_p1 = pnand %p1066_p0, %p1352_p2  ;;  %p1074_p4 = scmp.lt.u32.totalorder %s1065_s1, %s265_s13 }
  0x7f   : > { %p1073_p12 = por %p1072_p9, %p1071_p8 }
  0x80   : > { %p1069_p6 = pneg %p1068_p1 }
  0x81   : > { %p1075_p10 = por %p1074_p4, %p1073_p12 }
  0x83   : > { %p1076_p13 = pnand %p1075_p10, %p1069_p6 }
  0x85   : > { %1079 = shalt.err (!%p1076_p13)
}
  0x86   : > { %s1080_s20 = scalar_lea.vmem %s268_s11, 16  ;;  %s1222_s14 = smov [#allocation7]  }
  0x87   : > { %p1081_p11 = scmp.ne.s32.totalorder %s268_s11, %s1080_s20  ;;  %s1085_s7 = sshll.u32 %s1222_s14, 4  ;;  %s1086_s7 = int_to_ptr.vmem [resolvable:$false] %s1085_s7 }
  0x88   : > { %s1087_s15 = scalar_lea.vmem %s1086_s7, 32  ;;  %p1088_p0 = scmp.lt.s32.totalorder %s268_s11, %s1086_s7 }
  0x89   : > { %p1083_p7 = pnand %p1081_p11, %p1352_p2  ;;  %p1089_p1 = scmp.lt.s32.totalorder %s1087_s15, %s1080_s20 }
  0x8b   : > { %p1084_p3 = pneg %p1083_p7  ;;  %p1090_p5 = por %p1089_p1, %p1088_p0 }
  0x8d   : > { %p1091_p8 = pnand %p1090_p5, %p1084_p3 }
  0x8f   : > { %1094 = shalt.err (!%p1091_p8)
}
  0x90   : > { %p1625_p9 = scmp.ne.s32.totalorder %s1616_s12, 0  ;;  %s1473_s1 = scalar_lea.hbm %s1593_s4, %s796_s23 }
  0x91   : > { %s298_s10 = scalar_lea.vmem [#allocation10], %s1326_s9  ;;  %s1095_s26 = scalar_lea.hbm %s1473_s1, 16 }
  0x92   : > { %894 = dma.hbm_to_vmem [thread:$0]  (!%p1625_p9), %s265_s13, 16, %s268_s11, %s1346_s27  }
  0x93   : > { %s305_s16 = sshll.u32 %s298_s10, 4  ;;  %p1096_p5 = scmp.ne.s32.totalorder %s1473_s1, %s1095_s26  ;;  %s306_s16 = int_to_ptr.vmem [resolvable:$true] %s305_s16 }
  0x94   : > { %s1100_s11 = scalar_lea.hbm %s1593_s4, 32  ;;  %p1101_p4 = scmp.lt.u32.totalorder %s1473_s1, %s1593_s4 }
  0x95   : > { %p1098_p6 = pnand %p1096_p5, %p1352_p2  ;;  %p1102_p10 = scmp.lt.u32.totalorder %s1100_s11, %s1095_s26 }
  0x96   : > { %p1104_p11 = scmp.lt.u32.totalorder %s1095_s26, %s1473_s1 }
  0x97   : > { %p1099_p12 = pneg %p1098_p6  ;;  %p1103_p13 = por %p1102_p10, %p1101_p4 }
  0x99   : > { %p1105_p7 = por %p1104_p11, %p1103_p13 }
  0x9b   : > { %p1106_p3 = pnand %p1105_p7, %p1099_p12 }
  0x9d   : > { %1109 = shalt.err (!%p1106_p3)
}
  0x9e   : > { %s1110_s9 = scalar_lea.vmem %s306_s16, 16  ;;  %s1223_s23 = smov [#allocation10]  }
  0x9f   : > { %p1111_p0 = scmp.ne.s32.totalorder %s306_s16, %s1110_s9  ;;  %s1115_s14 = sshll.u32 %s1223_s23, 4  ;;  %s1116_s14 = int_to_ptr.vmem [resolvable:$false] %s1115_s14 }
  0xa0   : > { %s1117_s7 = scalar_lea.vmem %s1116_s14, 32  ;;  %p1118_p5 = scmp.lt.s32.totalorder %s306_s16, %s1116_s14 }
  0xa1   : > { %p1113_p1 = pnand %p1111_p0, %p1352_p2  ;;  %p1119_p6 = scmp.lt.s32.totalorder %s1117_s7, %s1110_s9 }
  0xa3   : > { %p1114_p8 = pneg %p1113_p1  ;;  %p1120_p9 = por %p1119_p6, %p1118_p5 }
  0xa5   : > { %p1121_p4 = pnand %p1120_p9, %p1114_p8 }
  0xa7   : > { %1124 = shalt.err (!%p1121_p4)
}
  0xa8   : > { %p1626_p10 = scmp.ne.s32.totalorder %s1616_s12, 0  ;;  %p1627_p12 = scmp.ne.s32.totalorder %s1619_s17, 0 }
  0xa9   : > { %s1497_s29 = sand.u32 (!%p1627_p12), 1, %s1199_s19   ;;  %p1628_p2 = scmp.ne.s32.totalorder (!%p1627_p12), %s1612_s30, 0 }
  0xaa   : > { %900 = dma.hbm_to_vmem [thread:$0]  (!%p1626_p10), %s1473_s1, 16, %s306_s16, %s1396_s25  }
  0xab   : > { %314 = sbr.rel (%p1627_p12) target bundleno = 953 (0x3b9), region = 40  ;;  %s802_s15 = sshll.u32 (!%p1627_p12), %s1497_s29, 3 }
  0xac   : > { %s317_s0 = scalar_lea.sflag (!%p1627_p12), [#allocation3], %s1497_s29  ;;  %s320_s28 = scalar_lea.vmem (!%p1627_p12), [#allocation2], %s802_s15 }
  0xb2   : > { %1178 = dma.done.wait (%p1628_p2), %s317_s0, 128  }
  0xb3   : > { %1180 = vsyncadd (%p1628_p2), %s317_s0, 4294967168  ;;  %s325_s12 = sand.u32 1, %s1288_s24   ;;  %s803_s17 = sshll.u32 %s1497_s29, 5 }
  0xb4   : > { %s326_s25 = scalar_lea.sflag [#allocation6], %s325_s12  ;;  %s329_s1 = scalar_lea.vmem [#allocation5], %s803_s17 }
  0xb5   : > { %1182 = dma.done.wait (%p1628_p2), %s326_s25, 528  }
  0xb6   : > { %1184 = vsyncadd (%p1628_p2), %s326_s25, 4294966768  ;;  %s804_s10 = sshll.u32 %s1497_s29, 6  ;;  %s337_s16 = scalar_lea.vmem [#allocation7], %s1497_s29 }
  0xb7   : > { %s343_s26 = scalar_lea.sflag [#allocation9], %s325_s12  ;;  %s1515_s3 = scalar_lea.vmem [#allocation8], %s804_s10 }
  0xb8   : > { %1186 = dma.done.wait (%p1628_p2), %s343_s26, 1040  }
  0xb9   : > { %1188 = vsyncadd (%p1628_p2), %s343_s26, 4294966256  ;;  %v400_v0 = vld [vmem:[%s320_s28] sm:$0xff]  ;;  %vm402_vm0 = vcmask 523264   ;;  %v959_v3 = vld [vmem:[%s329_s1] sm:$0xff]   ;;  %v1224_v4 = vmov 0.0   ;;  %vm1225_vm1 = vmmov 0  }
  0xba   : > { %v401_v1 = vmul.f32 %v400_v0, %v400_v0  ;;  %841 = vmatprep.subr.bf16.mxu0 %v1224_v4  ;;  %853 = vmatprep.subr.bf16.mxu1 %v1224_v4  ;;  %v960_v5 = vld [vmem:[%s329_s1 + $0x8] sm:$0xff]   ;;  %v961_v6 = vld [vmem:[%s329_s1 + $0x10] sm:$0xff]   ;;  %v962_v7 = vld [vmem:[%s329_s1 + $0x18] sm:$0xff]   ;;  %s354_s24 = scalar_lea.vmem [#allocation10], %s1497_s29  ;;  %s822_s30 = sshll.u32 %s1207_s21, 7 }
  0xbb   : > { %842 = vmatpush3.bf16.msra.mxu0 %v959_v3  ;;  %849 = vmatprep.mubr.msk.bf16.mxu0 %vm1225_vm1, %v1224_v4  ;;  %v963_v8 = vld [vmem:[%s1515_s3] sm:$0xff]   ;;  %v964_v9 = vld [vmem:[%s1515_s3 + $0x8] sm:$0xff]   ;;  %v965_v10 = vld [vmem:[%s1515_s3 + $0x10] sm:$0xff]   ;;  %s398_s27 = scalar_lea.vmem [#allocation11], %s802_s15  ;;  %s1540_s9 = scalar_lea.hbm %s1594_s5, %s822_s30 }
  0xbc   : > { %v403_v2 = vsel %vm402_vm0, %v401_v1, 0.0  ;;  %843 = vmatprep.subr.bf16.mxu0 %v1224_v4  ;;  %869 = vmatprep.mubr.msk.bf16.mxu1 %vm1225_vm1, %v1224_v4  ;;  %v966_v11 = vld [vmem:[%s1515_s3 + $0x18] sm:$0xff]   ;;  %v967_v12 = vld [vmem:[%s1515_s3 + $0x20] sm:$0xff]   ;;  %v968_v13 = vld [vmem:[%s1515_s3 + $0x28] sm:$0xff]   ;;  %s627_s11 = sshll.u32 %s398_s27, 4  ;;  %s613_s23 = scalar_lea.sflag [#allocation4], %s1497_s29  ;;  %s1542_s11 = int_to_ptr.vmem [resolvable:$true] %s627_s11 }
  0xbd   : > { %404 = vadd.xlane.f32.xlu0 %v403_v2  ;;  %854 = vmatpush3.bf16.msra.mxu1 %v963_v8  ;;  %v969_v19 = vld [vmem:[%s1515_s3 + $0x30] sm:$0xff]   ;;  %v970_v20 = vld [vmem:[%s1515_s3 + $0x38] sm:$0xff]   ;;  %v806_v21 = vld [vmem:[%s337_s16] ss:$0 sm:$0xff]  ;;  %s1125_s14 = scalar_lea.vmem %s1542_s11, 128  ;;  %p1629_p13 = scmp.ne.s32.totalorder %s1613_s6, 0 }
  0xbe   : > { %855 = vmatprep.subr.bf16.mxu1 %v1224_v4  ;;  %v812_v29 = vld [vmem:[%s354_s24] ss:$0 sm:$0xff]  ;;  %p1126_p9 = scmp.ne.s32.totalorder %s1542_s11, %s1125_s14  ;;  %s1226_s21 = smov [#allocation11]  }
  0xbf   : > { %844 = vmatpush3.bf16.msra.mxu0 %v960_v5  ;;  %s1129_s7 = sshll.u32 %s1226_s21, 4  ;;  %s1130_s7 = int_to_ptr.vmem [resolvable:$false] %s1129_s7 }
  0xc0   : > { %845 = vmatprep.subr.bf16.mxu0 %v1224_v4  ;;  %p1127_p11 = pnand %p1126_p9, %p1629_p13  ;;  %s1131_s15 = scalar_lea.vmem %s1130_s7, 256 }
  0xc1   : > { %856 = vmatpush3.bf16.msra.mxu1 %v964_v9  ;;  %p1132_p3 = scmp.lt.s32.totalorder %s1542_s11, %s1130_s7  ;;  %p1133_p0 = scmp.lt.s32.totalorder %s1131_s15, %s1125_s14 }
  0xc2   : > { %857 = vmatprep.subr.bf16.mxu1 %v1224_v4  ;;  %p1128_p7 = pneg %p1127_p11 }
  0xc3   : > { %846 = vmatpush3.bf16.msra.mxu0 %v961_v6  ;;  %p1134_p1 = por %p1133_p0, %p1132_p3 }
  0xc4   : > { %847 = vmatprep.subr.bf16.mxu0 %v1224_v4 }
  0xc5   : > { %858 = vmatpush3.bf16.msra.mxu1 %v965_v10  ;;  %p1135_p8 = pnand %p1134_p1, %p1128_p7 }
  0xc6   : > { %859 = vmatprep.subr.bf16.mxu1 %v1224_v4 }
  0xc7   : > { %848 = vmatpush3.bf16.msra.mxu0 %v962_v7 }
  0xc9   : > { %860 = vmatpush3.bf16.msra.mxu1 %v966_v11 }
  0xca   : > { %861 = vmatprep.subr.bf16.mxu1 %v1224_v4 }
  0xcd   : > { %862 = vmatpush3.bf16.msra.mxu1 %v967_v12 }
  0xce   : > { %863 = vmatprep.subr.bf16.mxu1 %v1224_v4 }
  0xd1   : > { %864 = vmatpush3.bf16.msra.mxu1 %v968_v13 }
  0xd2   : > { %865 = vmatprep.subr.bf16.mxu1 %v1224_v4 }
  0xd5   : > { %866 = vmatpush3.bf16.msra.mxu1 %v969_v19 }
  0xd6   : > { %867 = vmatprep.subr.bf16.mxu1 %v1224_v4 }
  0xd9   : > { %868 = vmatpush3.bf16.msra.mxu1 %v970_v20 }
 0x14a   : > { %v405_v14 = vpop.xlane.xlu0 %404 }
 0x14b   : > { %v406_v15 = vmax.f32 %v405_v14, 1e-24 }
 0x14d   : > { %971 = vrsqrt.f32 %v406_v15 }
 0x157   : > { %v972_v16 = vpop.eup %971 }
 0x158   : > { %v408_v17 = vmul.f32 %v972_v16, %v400_v0 }
 0x15a   : > { %v409_v18 = vpack.c.bf16 %v408_v17, %v408_v17 }
 0x15c   : > { %850 = vmatmul.mubr.msk.bf16.vlgmr.msra.gmra.mrb[0].mxu0 %vm402_vm0, %v409_v18 }
 0x22f   : > { %v487_v22 = vpop.f32.mrb[0].mxu0 }
 0x230   : > { %v488_v23 = vadd.f32 %v806_v21, %v487_v22  ;;  %v851_v24 = vpop.f32.mrb[1].mxu0 }
 0x231   : > { %v490_v25 = vpop.f32.mrb[2].mxu0 }
 0x232   : > { %v493_v26 = vmax.f32 %v488_v23, 0.0  ;;  %v852_v27 = vpop.f32.mrb[3].mxu0 }
 0x234   : > { %v494_v28 = vpack.c.bf16 %v493_v26, %v493_v26 }
 0x236   : > { %870 = vmatmul.mubr.bf16.vlgmr.msra.gmra.mrb[0].mxu1 %v494_v28 }
 0x309   : > { %v599_v30 = vpop.f32.mrb[0].mxu1 }
 0x30a   : > { %v600_v31 = vadd.f32 %v812_v29, %v599_v30  ;;  %v871_v32 = vpop.f32.mrb[1].mxu1 }
 0x30b   : > { %v602_v33 = vpop.f32.mrb[2].mxu1 }
 0x30c   : > { %v872_v34 = vpop.f32.mrb[3].mxu1  ;;  %v605_v35 = vmul.f32 %v600_v31, %v600_v31 }
 0x30e   : > { %606 = vadd.xlane.f32.xlu0 %v605_v35 }
 0x39b   : > { %v607_v36 = vpop.xlane.xlu0 %606 }
 0x39c   : > { %v608_v37 = vmax.f32 %v607_v36, 1e-24 }
 0x39e   : > { %973 = vrsqrt.f32 %v608_v37 }
 0x3a8   : > { %v974_v38 = vpop.eup %973 }
 0x3a9   : > { %v610_v39 = vmul.f32 %v974_v38, %v600_v31 }
 0x3ab   : > { %611 = vst [vmem:[%s398_s27] sm:$0xff] %v610_v39 }
 0x3ac   : > { %1138 = shalt.err (!%p1135_p8)
}
 0x3ad   : > { %s1139_s29 = scalar_lea.hbm %s1540_s9, 128  ;;  %s1143_s12 = scalar_lea.hbm %s1594_s5, 256 }
 0x3ae   : > { %p1140_p5 = scmp.ne.s32.totalorder %s1540_s9, %s1139_s29  ;;  %p1144_p10 = scmp.lt.u32.totalorder %s1540_s9, %s1594_s5 }
 0x3af   : > { %p1145_p12 = scmp.lt.u32.totalorder %s1143_s12, %s1139_s29  ;;  %p1147_p9 = scmp.lt.u32.totalorder %s1139_s29, %s1540_s9 }
 0x3b0   : > { %p1141_p6 = pnand %p1140_p5, %p1629_p13 }
 0x3b1   : > { %p1146_p2 = por %p1145_p12, %p1144_p10 }
 0x3b2   : > { %p1142_p4 = pneg %p1141_p6 }
 0x3b3   : > { %p1148_p11 = por %p1147_p9, %p1146_p2 }
 0x3b5   : > { %p1149_p7 = pnand %p1148_p11, %p1142_p4 }
 0x3b7   : > { %1152 = shalt.err (!%p1149_p7)
}
 0x3b8   : > { %883 = dma.vmem_to_hbm [thread:$0]  (%p1629_p13), %s1542_s11, 128, %s1540_s9, %s613_s23  }
 0x3b9 PF: > { %s1630_s1 = sld [smem:[#allocation17_spill]]  ;;  %s639_s10 = sand.u32 1, %s1195_s18  }
 0x3ba   : > { %p1631_p3 = scmp.ne.s32.totalorder %s1615_s8, 0  ;;  %s640_s16 = scalar_lea.sflag [#allocation4], %s639_s10 }
 0x3bf   : > { %p1632_p0 = scmp.ge.s32.totalorder %s1630_s1, 2 }
 0x3c1   : > { %p902_p1 = pnand %p1632_p0, %p1631_p3 }
 0x3c3   : > { %1190 = dma.done.wait (!%p902_p1), %s640_s16, 128  }
 0x3c4   : > { %1192 = vsyncadd (!%p902_p1), %s640_s16, 4294967168  ;;  %s27_s23 = sadd.s32 1, %s1630_s1   ;;  %s1633_s26 = sld [smem:[#allocation16_spill]] }
 0x3c5   : > { %p24_p8 = scmp.ge.s32.totalorder %s27_s23, 4   ;;  %s1634_s20 = sld [smem:[#allocation19_spill]] }
 0x3c6   : > { %s1635_s6 = sld [smem:[#allocation18_spill]]  ;;  %s1636_s18 = smov %s1199_s19 }
 0x3c7   : > { %s1638_s21 = smov %s1211_s22  ;;  %26 = sbr.rel (!%p24_p8) target bundleno = 14 (0xe), region = 133 }
 0x3ca   : > { %s1637_s19 = smov %s1633_s26 }
 0x3cc   : > { %s1639_s22 = smov %s1635_s6 }
 0x3ce   :  { %645 = vsyncpa [#allocation3], 1 }
 0x3cf   :  { %647 = vsyncpa [#allocation3 + $0x1], 1 }
 0x3d0   :  { %648 = vsyncpa [#allocation6], 1 }
 0x3d1   :  { %650 = vsyncpa [#allocation6 + $0x1], 1 }
 0x3d2   :  { %651 = vsyncpa [#allocation9], 1 }
 0x3d3   :  { %653 = vsyncpa [#allocation9 + $0x1], 1 }
 0x3d4   :  { %654 = vsyncpa [#allocation4], 1 }
 0x3d5   :  { %656 = vsyncpa [#allocation4 + $0x1], 1 }

</bundles_post_ra>
